<compile_context>
chip_gen: v5e
topology: v5e:2x2
jax: 0.10.0
libtpu: 0.0.40
codegen_flags: <defaults>
</compile_context>

<pallas_src>
import functools

import jax
import jax.numpy as jnp
from jax.experimental import pallas as pl
from jax.experimental.pallas import tpu as pltpu

_LANES = 128
_SUBLANES = 8
_MAX_ACC_ROWS = 64   # per-core resident accumulator rows; 64x128 f32 = 32 KiB


def _device_config():
    """Return (num_tensorcores, max_block_rows) for the local TPU generation."""
    try:
        kind = jax.devices()[0].device_kind.lower()
    except Exception:
        kind = ""
    if "v7" in kind or "7x" in kind:
        # 2 TensorCores/chip; 4 MiB blocks -> 16 MiB double-buffered (<< 32 MiB
        # scoped default, 64 MiB physical).
        return 2, 8192
    if "v6" in kind:
        # 1 TC; 4 MiB blocks fit the 32 MiB scoped default comfortably.
        return 1, 8192
    if "v5" in kind:
        # 1 TC (v5e); stay at 2 MiB blocks -> 8 MiB buffered under the 16 MiB
        # scoped default.
        return 1, 4096
    return 1, 2048   # conservative fallback for unknown parts


def _msle_kernel(pred_ref, actual_ref, out_ref, *, block_rows, acc_rows,
                 steps_per_core, m_rows):
    c = pl.program_id(0)   # parallel (TensorCore) axis
    i = pl.program_id(1)   # sequential reduction axis

    # Zero this core's resident accumulator at the start of its sweep.
    @pl.when(i == 0)
    def _():
        out_ref[...] = jnp.zeros_like(out_ref)

    # Unclamped element-row offset of this logical block.  Duplicated
    # (clamped) blocks have row_start >= m_rows and are fully masked below.
    row_start = (c * steps_per_core + i) * block_rows

    def diff():
        p = pred_ref[...].astype(jnp.float32)
        a = actual_ref[...].astype(jnp.float32)
        return jnp.log1p(p) - jnp.log1p(a)   # == log(p + 1) - log(a + 1)

    def accumulate(sq):
        # Fold block rows onto the (acc_rows, 128) accumulator with pure VPU
        # adds; acc_rows independent lanes/sublane chains keep the add-latency
        # chain short (block_rows // acc_rows dependent adds per vreg).
        out_ref[...] += jnp.sum(
            sq.reshape(block_rows // acc_rows, acc_rows, _LANES), axis=0)

    # Fast path (the common case): block fully in range -> no iota, no
    # compares, no selects in the hot loop.
    @pl.when(row_start + block_rows <= m_rows)
    def _full():
        d = diff()
        accumulate(d * d)

    # Slow path: at most one ragged (or fully-duplicated clamped) block per
    # core takes this branch.
    @pl.when(row_start + block_rows > m_rows)
    def _ragged():
        row_ids = row_start + jax.lax.broadcasted_iota(
            jnp.int32, (block_rows, _LANES), 0)
        valid = row_ids < m_rows
        d = diff()
        # NOTE: jnp.where lowers to a SELECT, so NaN/Inf produced by log1p on
        # out-of-range garbage rows does NOT propagate into the accumulator.
        # Do not replace this with a multiply-by-mask.
        accumulate(jnp.where(valid, d * d, 0.0))


def msle_loss(pred: jax.Array, actual: jax.Array) -> jax.Array:
    """mean((log(pred+1) - log(actual+1))**2), scalar float32 output."""
    assert pred.shape == actual.shape
    n_valid = pred.size
    if n_valid == 0:
        # Matches torch.nn.MSELoss over an empty tensor (mean of nothing = NaN).
        return jnp.float32(jnp.nan)

    num_cores, max_block_rows = _device_config()

    p_flat = pred.reshape(-1)
    a_flat = actual.reshape(-1)
    pad = (-n_valid) % (_SUBLANES * _LANES)
    if pad:
        # Rare ragged remainder (< 1024 elements).  Zero padding contributes
        # log1p(0) - log1p(0) = 0; we divide by the true element count.
        p_flat = jnp.pad(p_flat, (0, pad))
        a_flat = jnp.pad(a_flat, (0, pad))
    m_rows = p_flat.size // _LANES            # multiple of 8
    p2 = p_flat.reshape(m_rows, _LANES)       # free reshape of contiguous data
    a2 = a_flat.reshape(m_rows, _LANES)

    block_rows = min(max_block_rows, m_rows)  # multiple of 8 by construction
    acc_rows = next(r for r in (_MAX_ACC_ROWS, 32, 16, 8)
                    if block_rows % r == 0)
    total_blocks = pl.cdiv(m_rows, block_rows)
    steps_per_core = pl.cdiv(total_blocks, num_cores)
    last_block = total_blocks - 1

    def in_index(c, i):
        # Clamp so the DMA never targets a block entirely outside the array;
        # the in-kernel row mask zeroes any duplicated / padded rows.
        blk = c * steps_per_core + i
        return (jnp.minimum(blk, last_block), 0)

    kernel = functools.partial(
        _msle_kernel,
        block_rows=block_rows,
        acc_rows=acc_rows,
        steps_per_core=steps_per_core,
        m_rows=m_rows,
    )

    bytes_per_elt = pred.dtype.itemsize + actual.dtype.itemsize
    cost = pl.CostEstimate(
        flops=6 * n_valid,              # sub, mul, add (+ casts/selects slack)
        transcendentals=2 * n_valid,    # two log1p per element
        bytes_accessed=bytes_per_elt * n_valid,
    )

    # TODO(synk): on v7x, confirm with xprof that the outer "parallel" axis
    # lands on both TensorCores; if only one TC is busy, switch that axis to
    # pltpu.CORE_PARALLEL (keeping the per-core accumulator rows).
    partials = pl.pallas_call(
        kernel,
        out_shape=jax.ShapeDtypeStruct((num_cores * acc_rows, _LANES),
                                       jnp.float32),
        grid_spec=pltpu.PrefetchScalarGridSpec(
            num_scalar_prefetch=0,
            grid=(num_cores, steps_per_core),
            in_specs=[
                pl.BlockSpec((block_rows, _LANES), in_index),
                pl.BlockSpec((block_rows, _LANES), in_index),
            ],
            out_specs=pl.BlockSpec((acc_rows, _LANES), lambda c, i: (c, 0)),
        ),
        compiler_params=pltpu.CompilerParams(
            dimension_semantics=("parallel", "arbitrary"),
        ),
        cost_estimate=cost,
    )(p2, a2)

    # Final tiny reduction + mean.  1.0 / n_valid is computed in Python double
    # precision, so counts > 2**24 do not lose exactness before the f32 cast.
    return jnp.sum(partials) * jnp.float32(1.0 / n_valid)


if __name__ == "__main__":
    key = jax.random.PRNGKey(0)
    k1, k2 = jax.random.split(key)
    shape = (2, 4, 16, 16)
    # Positive inputs (as MSLE expects) keep log(pred+1) well-defined.
    pred = jax.random.uniform(k1, shape, dtype=jnp.float32, minval=0.0, maxval=5.0)
    actual = jax.random.uniform(k2, shape, dtype=jnp.float32, minval=0.0, maxval=5.0)

    loss = msle_loss(pred, actual)
    loss = jax.block_until_ready(loss)

    # Pure-JAX reference (same math as torch.log(x + 1.0)).
    ref = jnp.mean((jnp.log1p(pred) - jnp.log1p(actual)) ** 2)
    assert jnp.allclose(loss, ref, rtol=1e-5, atol=1e-6), (loss, ref)

    print("KERNEL_OK")
</pallas_src>

<mosaic_0001>
module attributes {stable_mosaic.version = 11 : i64} {
  func.func @_msle_kernel(%arg0: i32, %arg1: i32, %arg2: memref<16x128xf32, #tpu.memory_space<vmem>>, %arg3: memref<16x128xf32, #tpu.memory_space<vmem>>, %arg4: memref<16x128xf32, #tpu.memory_space<vmem>>) attributes {dimension_semantics = [#tpu.dimension_semantics<parallel>, #tpu.dimension_semantics<arbitrary>], iteration_bounds = array<i64: 1, 1>, scalar_prefetch = 0 : i64, scratch_operands = 0 : i64, tpu.core_type = #tpu.core_type<tc>, window_params = [{transform_indices = @transform_0, window_bounds = array<i64: 16, 128>}, {transform_indices = @transform_1, window_bounds = array<i64: 16, 128>}, {transform_indices = @transform_2, window_bounds = array<i64: 16, 128>}]} {
    %c0_i32 = arith.constant 0 : i32
    %0 = arith.cmpi eq, %arg1, %c0_i32 : i32
    %1 = arith.extui %0 : i1 to i32
    %c0_i32_0 = arith.constant 0 : i32
    %2 = arith.cmpi ne, %1, %c0_i32_0 : i32
    scf.if %2 {
      %cst = arith.constant 0.000000e+00 : f32
      %14 = vector.broadcast %cst : f32 to vector<16x128xf32>
      %c0 = arith.constant 0 : index
      %c0_7 = arith.constant 0 : index
      %15 = vector.load %arg4[%c0, %c0_7] : memref<16x128xf32, #tpu.memory_space<vmem>>, vector<16x128xf32>
      tpu.vector_store %arg4[%c0, %c0_7], %14 {strides = array<i32>} : memref<16x128xf32, #tpu.memory_space<vmem>>, vector<16x128xf32>,
    } else {
    }
    %c1_i32 = arith.constant 1 : i32
    %3 = arith.muli %arg0, %c1_i32 : i32
    %4 = arith.addi %3, %arg1 : i32
    %c16_i32 = arith.constant 16 : i32
    %5 = arith.muli %4, %c16_i32 : i32
    %c16_i32_1 = arith.constant 16 : i32
    %6 = arith.addi %5, %c16_i32_1 : i32
    %c16_i32_2 = arith.constant 16 : i32
    %7 = arith.cmpi sle, %6, %c16_i32_2 : i32
    %8 = arith.extui %7 : i1 to i32
    %c0_i32_3 = arith.constant 0 : i32
    %9 = arith.cmpi ne, %8, %c0_i32_3 : i32
    scf.if %9 {
      %c0 = arith.constant 0 : index
      %c0_7 = arith.constant 0 : index
      %14 = vector.load %arg2[%c0, %c0_7] : memref<16x128xf32, #tpu.memory_space<vmem>>, vector<16x128xf32>
      %c0_8 = arith.constant 0 : index
      %c0_9 = arith.constant 0 : index
      %15 = vector.load %arg3[%c0_8, %c0_9] : memref<16x128xf32, #tpu.memory_space<vmem>>, vector<16x128xf32>
      %16 = math.log1p %14 : vector<16x128xf32>
      %17 = math.log1p %15 : vector<16x128xf32>
      %18 = arith.subf %16, %17 : vector<16x128xf32>
      %19 = arith.mulf %18, %18 : vector<16x128xf32>
      %c0_10 = arith.constant 0 : index
      %c0_11 = arith.constant 0 : index
      %20 = vector.load %arg4[%c0_10, %c0_11] : memref<16x128xf32, #tpu.memory_space<vmem>>, vector<16x128xf32>
      %21 = vector.shape_cast %19 : vector<16x128xf32> to vector<1x16x128xf32>
      %cst = arith.constant dense<0.000000e+00> : vector<16x128xf32>
      %22 = vector.multi_reduction <add>, %21, %cst [0] : vector<1x16x128xf32> to vector<16x128xf32>
      %23 = arith.addf %20, %22 : vector<16x128xf32>
      %c0_12 = arith.constant 0 : index
      %c0_13 = arith.constant 0 : index
      %24 = vector.load %arg4[%c0_12, %c0_13] : memref<16x128xf32, #tpu.memory_space<vmem>>, vector<16x128xf32>
      tpu.vector_store %arg4[%c0_12, %c0_13], %23 {strides = array<i32>} : memref<16x128xf32, #tpu.memory_space<vmem>>, vector<16x128xf32>,
    } else {
    }
    %c16_i32_4 = arith.constant 16 : i32
    %10 = arith.addi %5, %c16_i32_4 : i32
    %c16_i32_5 = arith.constant 16 : i32
    %11 = arith.cmpi sgt, %10, %c16_i32_5 : i32
    %12 = arith.extui %11 : i1 to i32
    %c0_i32_6 = arith.constant 0 : i32
    %13 = arith.cmpi ne, %12, %c0_i32_6 : i32
    scf.if %13 {
      %14 = tpu.iota {dimensions = array<i32: 0>} : vector<16x128xi32>
      %15 = vector.broadcast %5 : i32 to vector<16x128xi32>
      %16 = arith.addi %15, %14 : vector<16x128xi32>
      %c16_i32_7 = arith.constant 16 : i32
      %17 = vector.broadcast %c16_i32_7 : i32 to vector<16x128xi32>
      %18 = arith.cmpi slt, %16, %17 : vector<16x128xi32>
      %c0 = arith.constant 0 : index
      %c0_8 = arith.constant 0 : index
      %19 = vector.load %arg2[%c0, %c0_8] : memref<16x128xf32, #tpu.memory_space<vmem>>, vector<16x128xf32>
      %c0_9 = arith.constant 0 : index
      %c0_10 = arith.constant 0 : index
      %20 = vector.load %arg3[%c0_9, %c0_10] : memref<16x128xf32, #tpu.memory_space<vmem>>, vector<16x128xf32>
      %21 = math.log1p %19 : vector<16x128xf32>
      %22 = math.log1p %20 : vector<16x128xf32>
      %23 = arith.subf %21, %22 : vector<16x128xf32>
      %24 = arith.mulf %23, %23 : vector<16x128xf32>
      %cst = arith.constant 0.000000e+00 : f32
      %25 = vector.broadcast %cst : f32 to vector<16x128xf32>
      %26 = arith.select %18, %24, %25 : vector<16x128xi1>, vector<16x128xf32>
      %c0_11 = arith.constant 0 : index
      %c0_12 = arith.constant 0 : index
      %27 = vector.load %arg4[%c0_11, %c0_12] : memref<16x128xf32, #tpu.memory_space<vmem>>, vector<16x128xf32>
      %28 = vector.shape_cast %26 : vector<16x128xf32> to vector<1x16x128xf32>
      %cst_13 = arith.constant dense<0.000000e+00> : vector<16x128xf32>
      %29 = vector.multi_reduction <add>, %28, %cst_13 [0] : vector<1x16x128xf32> to vector<16x128xf32>
      %30 = arith.addf %27, %29 : vector<16x128xf32>
      %c0_14 = arith.constant 0 : index
      %c0_15 = arith.constant 0 : index
      %31 = vector.load %arg4[%c0_14, %c0_15] : memref<16x128xf32, #tpu.memory_space<vmem>>, vector<16x128xf32>
      tpu.vector_store %arg4[%c0_14, %c0_15], %30 {strides = array<i32>} : memref<16x128xf32, #tpu.memory_space<vmem>>, vector<16x128xf32>,
    } else {
    }
    return
  }
  func.func @transform_0(%arg0: i32, %arg1: i32) -> (i32, i32) {
    %c1_i32 = arith.constant 1 : i32
    %0 = arith.muli %arg0, %c1_i32 : i32
    %1 = arith.addi %0, %arg1 : i32
    %c0_i32 = arith.constant 0 : i32
    %2 = arith.minsi %1, %c0_i32 : i32
    %c0_i32_0 = arith.constant 0 : i32
    %c0_i32_1 = arith.constant 0 : i32
    return %2, %c0_i32_0 : i32, i32
  }
  func.func @transform_1(%arg0: i32, %arg1: i32) -> (i32, i32) {
    %c1_i32 = arith.constant 1 : i32
    %0 = arith.muli %arg0, %c1_i32 : i32
    %1 = arith.addi %0, %arg1 : i32
    %c0_i32 = arith.constant 0 : i32
    %2 = arith.minsi %1, %c0_i32 : i32
    %c0_i32_0 = arith.constant 0 : i32
    %c0_i32_1 = arith.constant 0 : i32
    return %2, %c0_i32_0 : i32, i32
  }
  func.func @transform_2(%arg0: i32, %arg1: i32) -> (i32, i32) {
    %c0_i32 = arith.constant 0 : i32
    %c0_i32_0 = arith.constant 0 : i32
    return %arg0, %c0_i32 : i32, i32
  }
}

</mosaic_0001>

<bundles_post_ra>
// kernel: tpu_custom_call.1
= control target key start
LH: loop header
LB: loop body
LE: loop exit
PB: predicated region body
PF: predicated region fallthrough
CT: control target
= control target key end

     0   :  { %7 = vsyncpa [#allocation3], 0  ;;  %s355_s0 = inlined_call_operand.hbm [shape: f32[16,128], index: 0, kind: input, shape index: {}]   ;;  %s356_s1 = inlined_call_operand.hbm [shape: f32[16,128], index: 1, kind: input, shape index: {}]   ;;  %s357_s2 = inlined_call_operand.hbm [shape: f32[16,128], index: 2, kind: output, shape index: {}]  }
   0x1   :  { %8 = vsyncpa [#allocation6], 0 }
   0x2   :  { %9 = vsyncpa [#allocation4], 0  ;;  %s20_s11 = sshll.u32 %s355_s0, 4  ;;  %s311_s12 = smov [#allocation2]   ;;  %s21_s11 = int_to_ptr.hbm [resolvable:$true] %s20_s11 }
   0x3   :  { %s22_s13 = sshll.u32 %s311_s12, 4  ;;  %s39_s16 = sshll.u32 %s356_s1, 4  ;;  %s23_s13 = int_to_ptr.vmem [resolvable:$true] %s22_s13  ;;  %s40_s16 = int_to_ptr.hbm [resolvable:$true] %s39_s16 }
   0x4   :  { %s312_s17 = smov 128   ;;  %s313_s18 = smov 8  }
   0x5   :  { %28 = dma.hbm_to_vmem [thread:$0]  %s21_s11, 256, %s23_s13, [#allocation3], %s312_s17, %s312_s17, %s313_s18  }
   0x6   :  { %s314_s19 = smov [#allocation5]  }
   0x7   :  { %s41_s20 = sshll.u32 %s314_s19, 4  ;;  %s42_s20 = int_to_ptr.vmem [resolvable:$true] %s41_s20 }
   0x8   :  { %47 = dma.hbm_to_vmem [thread:$0]  %s40_s16, 256, %s42_s20, [#allocation6], %s312_s17, %s312_s17, %s313_s18  }
   0x9   :  { %305 = dma.done.wait [#allocation3], 256  }
   0xa   :  { %306 = vsyncadd [#allocation3], 4294967040 }
   0xb   :  { %307 = dma.done.wait [#allocation6], 256  }
   0xc   :  { %308 = vsyncadd [#allocation6], 4294967040  ;;  %v77_v0 = vld [vmem:[#allocation2] sm:$0xff]  ;;  %v79_v1 = vld [vmem:[#allocation5] sm:$0xff]  ;;  %s315_s0 = smov [#allocation7]   ;;  %s201_s23 = sshll.u32 %s357_s2, 4  ;;  %s202_s23 = int_to_ptr.hbm [resolvable:$true] %s201_s23 }
   0xd   :  { %v78_v2 = vld [vmem:[#allocation2 + $0x8] sm:$0xff]  ;;  %v81_v3 = vadd.f32 1.0, %v77_v0  ;;  %v84_v4 = vmul.f32 -0.5, %v77_v0  ;;  %v99_v5 = vadd.f32 1.0, %v79_v1  ;;  %v102_v6 = vmul.f32 -0.5, %v79_v1  ;;  %v80_v7 = vld [vmem:[#allocation5 + $0x8] sm:$0xff] }
   0xe   :  { %v90_v8 = vadd.f32 1.0, %v78_v2  ;;  %v93_v9 = vmul.f32 -0.5, %v78_v2  ;;  %v87_v11 = vand.u32 2147483647, %v77_v0  ;;  %v108_v13 = vadd.f32 1.0, %v80_v7  ;;  %s199_s1 = sshll.u32 %s315_s0, 4  ;;  %s200_s1 = int_to_ptr.vmem [resolvable:$true] %s199_s1 }
   0xf   :  { %225 = vlog2.f32 %v81_v3  ;;  %v85_v10 = vadd.f32 1.0, %v84_v4  ;;  %v103_v12 = vadd.f32 1.0, %v102_v6  ;;  %v105_v14 = vand.u32 2147483647, %v79_v1 }
  0x10   :  { %227 = vlog2.f32 %v99_v5  ;;  %v94_v15 = vadd.f32 1.0, %v93_v9  ;;  %v111_v16 = vmul.f32 -0.5, %v80_v7  ;;  %v96_v17 = vand.u32 2147483647, %v78_v2 }
  0x11   :  { %229 = vlog2.f32 %v90_v8  ;;  %v86_v18 = vmul.f32 %v85_v10, %v77_v0  ;;  %vm343_vm0 = vcmp.lt.f32.partialorder %v87_v11, 0.0004427343  ;;  %v104_v22 = vmul.f32 %v103_v12, %v79_v1 }
  0x12   :  { %231 = vlog2.f32 %v108_v13  ;;  %v112_v19 = vadd.f32 1.0, %v111_v16  ;;  %v114_v23 = vand.u32 2147483647, %v80_v7  ;;  %vm106_vm1 = vcmp.lt.f32.partialorder %v105_v14, 0.0004427343 }
  0x13   :  { %v95_v26 = vmul.f32 %v94_v15, %v78_v2  ;;  %vm97_vm2 = vcmp.lt.f32.partialorder %v96_v17, 0.0004427343 }
  0x14   :  { %v113_v31 = vmul.f32 %v112_v19, %v80_v7  ;;  %vm115_vm3 = vcmp.lt.f32.partialorder %v114_v23, 0.0004427343 }
  0x15   :  { %v226_v20 = vpop.eup %225 }
  0x16   :  { %v228_v24 = vpop.eup %227  ;;  %v83_v25 = vmul.f32 0.6931472, %v226_v20 }
  0x17   :  { %v230_v27 = vpop.eup %229  ;;  %v101_v28 = vmul.f32 0.6931472, %v228_v24 }
  0x18   :  { %v89_v29 = vsel %vm343_vm0, %v86_v18, %v83_v25  ;;  %v92_v30 = vmul.f32 0.6931472, %v230_v27  ;;  %v232_v32 = vpop.eup %231 }
  0x19   :  { %v107_v33 = vsel %vm106_vm1, %v104_v22, %v101_v28  ;;  %v110_v36 = vmul.f32 0.6931472, %v232_v32 }
  0x1a   :  { %v117_v34 = vsub.f32 %v89_v29, %v107_v33  ;;  %v98_v35 = vsel %vm97_vm2, %v95_v26, %v92_v30 }
  0x1b   :  { %v116_v38 = vsel %vm115_vm3, %v113_v31, %v110_v36 }
  0x1c   :  { %v119_v37 = vmul.f32 %v117_v34, %v117_v34  ;;  %v118_v39 = vsub.f32 %v98_v35, %v116_v38 }
  0x1e   :  { %v120_v40 = vmul.f32 %v118_v39, %v118_v39  ;;  %127 = vst [vmem:[#allocation7] sm:$0xff] %v119_v37 }
  0x20   :  { %128 = vst [vmem:[#allocation7 + $0x8] sm:$0xff] %v120_v40 }
  0x21   :  { %207 = dma.vmem_to_hbm [thread:$0]  %s200_s1, 256, %s202_s23, [#allocation4], %s312_s17, %s312_s17, %s313_s18  }
  0x22   :  { %309 = dma.done.wait [#allocation4], 256  }
  0x23   :  { %310 = vsyncadd [#allocation4], 4294967040 }
  0x24   :  { %212 = vsyncpa [#allocation3], 1 }
  0x25   :  { %213 = vsyncpa [#allocation6], 1 }
  0x26   :  { %214 = vsyncpa [#allocation4], 1 }

</bundles_post_ra>
